<compile_context>
chip_gen: v7x
topology: tpu7x:2x2x1
jax: 0.10.0
libtpu: 0.0.40
codegen_flags: <defaults>
</compile_context>

<pallas_src>
import functools

import jax
import jax.numpy as jnp
from jax import lax
from jax.experimental import pallas as pl
from jax.experimental.pallas import tpu as pltpu

LANE = 128   # lane granule
SUB = 16     # sublane granule for bf16-packed activations


# ----------------------------------------------------------------------------
# Small helpers
# ----------------------------------------------------------------------------
def _round_up(n, m):
    return (n + m - 1) // m * m


def _largest_divisor_leq(n, cap):
    cap = max(1, min(n, int(cap)))
    for d in range(cap, 0, -1):
        if n % d == 0:
            return d
    return 1


def _vmem_capacity_bytes():
    """Generation-aware VMEM capacity (v7x: 64 MiB/TC, v5e/v6e: 128 MiB)."""
    try:
        info = pltpu.get_tpu_info()
        cap = int(getattr(info, "vmem_capacity_bytes"))
        if cap > 0:
            return cap
    except Exception:
        pass
    return 64 << 20   # assume the most restrictive generation


def _vmem_budget():
    """Bytes we allow our accounted blocks to use (headroom for Mosaic)."""
    return int(0.45 * _vmem_capacity_bytes())


def _compiler_params(semantics, vmem_bytes):
    cap = _vmem_capacity_bytes()
    hi = int(0.9 * cap)
    lo = min(32 << 20, hi)
    vmem_bytes = int(min(max(int(vmem_bytes), lo), hi))
    return pltpu.CompilerParams(dimension_semantics=semantics,
                                vmem_limit_bytes=vmem_bytes)


# ----------------------------------------------------------------------------
# Pallas kernels
# ----------------------------------------------------------------------------
def _proj_kernel_single(x_ref, w_ref, b_ref, gf_ref, gb_ref):
    """Layer-0 input projection for both directions on one row tile.

    x_ref: (bn, Dinp) bf16, w_ref: (2, Dinp, 3Hp) bf16, b_ref: (2, 1, 3Hp) f32
    gf_ref / gb_ref: (bn, 3Hp) f32.
    """
    x = x_ref[...]
    gf_ref[...] = jnp.dot(x, w_ref[0],
                          preferred_element_type=jnp.float32) + b_ref[0]
    gb_ref[...] = jnp.dot(x, w_ref[1],
                          preferred_element_type=jnp.float32) + b_ref[1]


def _proj_kernel_pair(xa_ref, xb_ref, w_ref, b_ref, gf_ref, gb_ref):
    """Layer>0 projection; previous layer output kept as two lane-dense halves.

    xa/xb: (bn, Hp) bf16, w_ref: (4, Hp, 3Hp) bf16 ordered
    [fwd@prev_f, fwd@prev_b, bwd@prev_f, bwd@prev_b], b_ref: (2, 1, 3Hp) f32.
    """
    xa = xa_ref[...]
    xb = xb_ref[...]
    gf_ref[...] = (jnp.dot(xa, w_ref[0], preferred_element_type=jnp.float32)
                   + jnp.dot(xb, w_ref[1], preferred_element_type=jnp.float32)
                   + b_ref[0])
    gb_ref[...] = (jnp.dot(xa, w_ref[2], preferred_element_type=jnp.float32)
                   + jnp.dot(xb, w_ref[3], preferred_element_type=jnp.float32)
                   + b_ref[1])


def _bigru_recurrence_kernel(gf_ref, gb_ref, whh_ref, bhn_ref,
                             of_ref, ob_ref, h_scr,
                             *, Bp, Hp, tT, unroll):
    """Fused fwd+bwd GRU recurrence over one time chunk.

    gf_ref: (tT*Bp, 3Hp) f32  hoisted projection, forward dir, chunk c
    gb_ref: (tT*Bp, 3Hp) f32  hoisted projection, backward dir, chunk nc-1-c
    whh_ref: (2, Hp, 3Hp) bf16 ; bhn_ref: (2, 1, Hp) f32 (n-gate hidden bias)
    of_ref / ob_ref: (tT*Bp, Hp) bf16 outputs (natural time order)
    h_scr: (2, Bp, Hp) f32 running hidden state, persists across chunks.
    """
    c = pl.program_id(0)

    @pl.when(c == 0)
    def _():
        h_scr[...] = jnp.zeros_like(h_scr)

    def cell(gi, gh, h_prev, b_hn):
        # PyTorch gate order r | z | n (b_hh for r,z already folded into gi).
        rz = jax.nn.sigmoid(gi[:, :2 * Hp] + gh[:, :2 * Hp])
        n = jnp.tanh(gi[:, 2 * Hp:] + rz[:, :Hp] * (gh[:, 2 * Hp:] + b_hn))
        z = rz[:, Hp:]
        return (1.0 - z) * n + z * h_prev

    def step(s, carry):
        rf = pl.multiple_of(s * Bp, Bp)                 # fwd walks 0..tT-1
        rb = pl.multiple_of((tT - 1 - s) * Bp, Bp)      # bwd walks tT-1..0
        h_f = h_scr[0]
        h_b = h_scr[1]
        gh_f = jnp.dot(h_f.astype(jnp.bfloat16), whh_ref[0],
                       preferred_element_type=jnp.float32)
        gh_b = jnp.dot(h_b.astype(jnp.bfloat16), whh_ref[1],
                       preferred_element_type=jnp.float32)
        hf = cell(gf_ref[pl.ds(rf, Bp), :], gh_f, h_f, bhn_ref[0])
        hb = cell(gb_ref[pl.ds(rb, Bp), :], gh_b, h_b, bhn_ref[1])
        h_scr[0] = hf
        h_scr[1] = hb
        of_ref[pl.ds(rf, Bp), :] = hf.astype(of_ref.dtype)
        ob_ref[pl.ds(rb, Bp), :] = hb.astype(ob_ref.dtype)
        return carry

    lax.fori_loop(0, tT, step, 0, unroll=unroll)


def _classifier_kernel(xa_ref, xb_ref, w1_ref, b1_ref, w2_ref, b2_ref, o_ref):
    """Linear(2Hp->Hp) -> ReLU -> Linear(Hp->Cp) on one row tile."""
    h = (jnp.dot(xa_ref[...], w1_ref[0], preferred_element_type=jnp.float32)
         + jnp.dot(xb_ref[...], w1_ref[1], preferred_element_type=jnp.float32)
         + b1_ref[...])
    h = jnp.maximum(h, 0.0).astype(jnp.bfloat16)
    o_ref[...] = jnp.dot(h, w2_ref[...],
                         preferred_element_type=jnp.float32) + b2_ref[...]


# ----------------------------------------------------------------------------
# Wrappers around pallas_call
# ----------------------------------------------------------------------------
def input_projection(xa, xb, w_ih, b_gi, T, Bp, Hp):
    """gi_{fwd,bwd} = x @ W_ih + (b_ih + [b_hh_rz | 0]) for a whole layer."""
    N, G = T * Bp, 3 * Hp
    budget = _vmem_budget()
    in_cols = xa.shape[1] if xb is None else 2 * Hp
    # per-row bytes of pipelined blocks (2x = default double buffering)
    per_row = 2 * in_cols * 2 + 2 * 2 * G * 4
    w_bytes = 2 * w_ih.size * 2 + 2 * b_gi.size * 4
    row_target = 1024 if budget >= (48 << 20) else 512
    rows_cap = max(Bp, (budget - w_bytes) // max(per_row, 1))
    d = _largest_divisor_leq(T, max(1, min(row_target, rows_cap) // Bp))
    bn = d * Bp
    vmem = w_bytes + bn * per_row + (4 << 20)

    out_shape = (jax.ShapeDtypeStruct((N, G), jnp.float32),
                 jax.ShapeDtypeStruct((N, G), jnp.float32))
    out_specs = (pl.BlockSpec((bn, G), lambda i: (i, 0)),
                 pl.BlockSpec((bn, G), lambda i: (i, 0)))
    if xb is None:
        kernel = _proj_kernel_single
        in_specs = [pl.BlockSpec((bn, xa.shape[1]), lambda i: (i, 0)),
                    pl.BlockSpec(w_ih.shape, lambda i: (0, 0, 0)),
                    pl.BlockSpec(b_gi.shape, lambda i: (0, 0, 0))]
        args = (xa, w_ih, b_gi)
    else:
        kernel = _proj_kernel_pair
        in_specs = [pl.BlockSpec((bn, Hp), lambda i: (i, 0)),
                    pl.BlockSpec((bn, Hp), lambda i: (i, 0)),
                    pl.BlockSpec(w_ih.shape, lambda i: (0, 0, 0)),
                    pl.BlockSpec(b_gi.shape, lambda i: (0, 0, 0))]
        args = (xa, xb, w_ih, b_gi)

    return pl.pallas_call(
        kernel,
        out_shape=out_shape,
        grid=(N // bn,),
        in_specs=in_specs,
        out_specs=out_specs,
        compiler_params=_compiler_params(("parallel",), vmem),
    )(*args)


def bigru_recurrence(gi_f, gi_b, w_hh, b_hn, T, Bp, Hp):
    """Fused bidirectional GRU recurrence; returns (out_fwd, out_bwd) bf16."""
    G = 3 * Hp
    budget = _vmem_budget()
    w_bytes = 2 * w_hh.size * 2 + 2 * b_hn.size * 4
    # bytes per unit of tT: gi inputs (2 dirs x 2 bufs, f32) + outputs
    # (2 dirs x 2 bufs, bf16)
    per_t = Bp * (2 * 2 * G * 4 + 2 * 2 * Hp * 2)
    tT = _largest_divisor_leq(T, max(1, (budget - w_bytes) // per_t))
    nc = T // tT
    rows = tT * Bp
    vmem = w_bytes + tT * per_t + 2 * Bp * Hp * 4 + (4 << 20)
    unroll = True if tT <= 8 else 2

    kernel = functools.partial(_bigru_recurrence_kernel,
                               Bp=Bp, Hp=Hp, tT=tT, unroll=unroll)
    out_f, out_b = pl.pallas_call(
        kernel,
        out_shape=(jax.ShapeDtypeStruct((T * Bp, Hp), jnp.bfloat16),
                   jax.ShapeDtypeStruct((T * Bp, Hp), jnp.bfloat16)),
        grid=(nc,),
        in_specs=[
            pl.BlockSpec((rows, G), lambda c: (c, 0)),
            pl.BlockSpec((rows, G), lambda c, nc=nc: (nc - 1 - c, 0)),
            pl.BlockSpec(w_hh.shape, lambda c: (0, 0, 0)),
            pl.BlockSpec(b_hn.shape, lambda c: (0, 0, 0)),
        ],
        out_specs=(
            pl.BlockSpec((rows, Hp), lambda c: (c, 0)),
            pl.BlockSpec((rows, Hp), lambda c, nc=nc: (nc - 1 - c, 0)),
        ),
        scratch_shapes=[pltpu.VMEM((2, Bp, Hp), jnp.float32)],
        # The chunk axis carries the recurrence in h_scr: it MUST stay
        # "arbitrary" (sequential) — never mark it parallel.
        compiler_params=_compiler_params(("arbitrary",), vmem),
    )(gi_f, gi_b, w_hh, b_hn)
    return out_f, out_b


def classifier(xa, xb, w1, b1, w2, b2, T, Bp, Hp, Cp):
    """Row-tiled MLP head on the two lane-dense GRU output halves."""
    N = T * Bp
    budget = _vmem_budget()
    w_bytes = 2 * (w1.size + w2.size) * 2 + 2 * (b1.size + b2.size) * 4
    per_row = 2 * 2 * Hp * 2 + 2 * Cp * 4 + Hp * 4 + Hp * 2
    row_target = 512 if budget >= (48 << 20) else 256
    rows_cap = max(Bp, (budget - w_bytes) // max(per_row, 1))
    d = _largest_divisor_leq(T, max(1, min(row_target, rows_cap) // Bp))
    bn = d * Bp
    vmem = w_bytes + bn * per_row + (4 << 20)

    return pl.pallas_call(
        _classifier_kernel,
        out_shape=jax.ShapeDtypeStruct((N, Cp), jnp.float32),
        grid=(N // bn,),
        in_specs=[
            pl.BlockSpec((bn, Hp), lambda i: (i, 0)),
            pl.BlockSpec((bn, Hp), lambda i: (i, 0)),
            pl.BlockSpec(w1.shape, lambda i: (0, 0, 0)),
            pl.BlockSpec(b1.shape, lambda i: (0, 0)),
            pl.BlockSpec(w2.shape, lambda i: (0, 0)),
            pl.BlockSpec(b2.shape, lambda i: (0, 0)),
        ],
        out_specs=pl.BlockSpec((bn, Cp), lambda i: (i, 0)),
        compiler_params=_compiler_params(("parallel",), vmem),
    )(xa, xb, w1, b1, w2, b2)


def gru_res_forward(x_btd, pparams, n_classes):
    """x_btd: (B, T, in_dim) batch_first, like the PyTorch module."""
    B, T, Din = x_btd.shape
    Hp, Cp, Dinp = pparams["Hp"], pparams["Cp"], pparams["Dinp"]
    Bp = _round_up(B, SUB)

    # time-major, batch padded to the sublane granule, lanes padded to 128.
    x = jnp.transpose(x_btd, (1, 0, 2)).astype(jnp.float32)          # (T,B,Din)
    x = jnp.pad(x, ((0, 0), (0, Bp - B), (0, Dinp - Din)))
    xa = x.reshape(T * Bp, Dinp).astype(jnp.bfloat16)
    xb = None
    for lp in pparams["gru"]:
        gi_f, gi_b = input_projection(xa, xb, lp["w_ih"], lp["b_gi"],
                                      T, Bp, Hp)
        xa, xb = bigru_recurrence(gi_f, gi_b, lp["w_hh"], lp["b_hn"],
                                  T, Bp, Hp)
    logits = classifier(xa, xb, pparams["w1"], pparams["b1"],
                        pparams["w2"], pparams["b2"], T, Bp, Hp, Cp)
    logits = logits.reshape(T, Bp, Cp)[:, :B, :n_classes]
    return jnp.transpose(logits, (1, 0, 2))


# ----------------------------------------------------------------------------
# Parameter init (PyTorch shapes, pre-transposed) + padding / repacking
# ----------------------------------------------------------------------------
def init_params(key, in_dim, hidden_dim, n_layer, n_classes):
    H = hidden_dim
    kg = 1.0 / (H ** 0.5)

    def u(k, shape, bound):
        return jax.random.uniform(k, shape, jnp.float32, -bound, bound)

    params = {"gru": []}
    for layer in range(n_layer):
        d_in = in_dim if layer == 0 else 2 * H
        lp = {}
        for direction in ("fwd", "bwd"):
            key, k1, k2, k3, k4 = jax.random.split(key, 5)
            lp[direction] = {
                # stored pre-transposed vs torch: (Din, 3H)/(H, 3H), gates r|z|n
                "w_ih": u(k1, (d_in, 3 * H), kg),
                "w_hh": u(k2, (H, 3 * H), kg),
                "b_ih": u(k3, (3 * H,), kg),
                "b_hh": u(k4, (3 * H,), kg),
            }
        params["gru"].append(lp)

    key, k1, k2, k3, k4 = jax.random.split(key, 5)
    b1b = 1.0 / ((2 * H) ** 0.5)
    b2b = 1.0 / (H ** 0.5)
    params["w1"] = u(k1, (2 * H, H), b1b)
    params["b1"] = u(k2, (H,), b1b)
    params["w2"] = u(k3, (H, n_classes), b2b)
    params["b2"] = u(k4, (n_classes,), b2b)
    return params


def pad_params(params, in_dim, hidden_dim, n_classes):
    """Lane-padded, direction-stacked, bf16 weights for the kernels."""
    H, C = hidden_dim, n_classes
    Hp = _round_up(H, LANE)
    Cp = _round_up(C, LANE)
    Dinp = _round_up(in_dim, LANE)
    out = {"Hp": Hp, "Cp": Cp, "Dinp": Dinp, "gru": []}

    def pad_gates_cols(w):       # (..., 3H) -> (..., 3Hp), per-gate zero pad
        pads = [(0, 0)] * (w.ndim - 1) + [(0, Hp - H)]
        return jnp.concatenate(
            [jnp.pad(w[..., g * H:(g + 1) * H], pads) for g in range(3)],
            axis=-1)

    for li, layer in enumerate(params["gru"]):
        w_ih_d, b_gi_d, w_hh_d, b_hn_d = [], [], [], []
        for dname in ("fwd", "bwd"):
            p = layer[dname]
            b_ih, b_hh = p["b_ih"], p["b_hh"]
            # fold b_hh of the r,z gates into the projection bias.
            b_gi = jnp.concatenate([b_ih[:2 * H] + b_hh[:2 * H], b_ih[2 * H:]])
            b_gi_d.append(pad_gates_cols(b_gi[None, :]))                # (1,3Hp)
            b_hn_d.append(jnp.pad(b_hh[2 * H:][None, :],
                                  ((0, 0), (0, Hp - H))))               # (1,Hp)
            w_hh = jnp.pad(p["w_hh"], ((0, Hp - H), (0, 0)))            # (Hp,3H)
            w_hh_d.append(pad_gates_cols(w_hh))                         # (Hp,3Hp)
            w_ih = p["w_ih"]
            if li == 0:
                w_ih = jnp.pad(w_ih, ((0, Dinp - in_dim), (0, 0)))
                w_ih_d.append(pad_gates_cols(w_ih)[None])               # (1,Dinp,3Hp)
            else:
                # input rows are [prev_fwd | prev_bwd]; split per half.
                for h in range(2):
                    wh = jnp.pad(w_ih[h * H:(h + 1) * H],
                                 ((0, Hp - H), (0, 0)))
                    w_ih_d.append(pad_gates_cols(wh)[None])             # (1,Hp,3Hp)
        lp = {
            # layer 0: (2, Dinp, 3Hp); layer>0: (4, Hp, 3Hp)
            "w_ih": jnp.concatenate(w_ih_d, axis=0).astype(jnp.bfloat16),
            "b_gi": jnp.stack(b_gi_d).astype(jnp.float32),   # (2, 1, 3Hp)
            "w_hh": jnp.stack(w_hh_d).astype(jnp.bfloat16),  # (2, Hp, 3Hp)
            "b_hn": jnp.stack(b_hn_d).astype(jnp.float32),   # (2, 1, Hp)
        }
        out["gru"].append(lp)

    w1 = params["w1"]                                        # (2H, H)
    w1_halves = [jnp.pad(w1[h * H:(h + 1) * H], ((0, Hp - H), (0, Hp - H)))
                 for h in range(2)]
    out["w1"] = jnp.stack(w1_halves).astype(jnp.bfloat16)    # (2, Hp, Hp)
    out["b1"] = jnp.pad(params["b1"][None, :],
                        ((0, 0), (0, Hp - H))).astype(jnp.float32)
    out["w2"] = jnp.pad(params["w2"],
                        ((0, Hp - H), (0, Cp - C))).astype(jnp.bfloat16)
    out["b2"] = jnp.pad(params["b2"][None, :],
                        ((0, 0), (0, Cp - C))).astype(jnp.float32)
    return out


# ----------------------------------------------------------------------------
# Pure-JAX reference (same math; optionally matching the kernel's bf16 casts)
# ----------------------------------------------------------------------------
def _bf16r(x):
    return x.astype(jnp.bfloat16).astype(jnp.float32)


def _gru_dir_ref(x_tbd, w_ih, w_hh, b_ih, b_hh, cast):
    H = w_hh.shape[0]

    def step(h, x_t):
        gi = x_t @ w_ih + b_ih
        gh = cast(h) @ w_hh + b_hh
        r = jax.nn.sigmoid(gi[:, :H] + gh[:, :H])
        z = jax.nn.sigmoid(gi[:, H:2 * H] + gh[:, H:2 * H])
        n = jnp.tanh(gi[:, 2 * H:] + r * gh[:, 2 * H:])
        h_new = (1.0 - z) * n + z * h
        return h_new, h_new

    h0 = jnp.zeros((x_tbd.shape[1], H), jnp.float32)
    _, ys = lax.scan(step, h0, x_tbd)
    return ys


def gru_res_forward_ref(x_btd, params, *, match_bf16=True):
    cast = _bf16r if match_bf16 else (lambda a: a)
    layer_in = cast(jnp.transpose(x_btd, (1, 0, 2)).astype(jnp.float32))
    for lp in params["gru"]:
        hs = []
        for dname in ("fwd", "bwd"):
            p = lp[dname]
            xin = layer_in if dname == "fwd" else layer_in[::-1]
            ys = _gru_dir_ref(xin, cast(p["w_ih"]), cast(p["w_hh"]),
                              p["b_ih"], p["b_hh"], cast)
            hs.append(ys if dname == "fwd" else ys[::-1])
        layer_in = cast(jnp.concatenate(hs, axis=-1))
    T, B, _ = layer_in.shape
    flat = layer_in.reshape(T * B, -1)
    h = jnp.maximum(flat @ cast(params["w1"]) + params["b1"], 0.0)
    logits = cast(h) @ cast(params["w2"]) + params["b2"]
    return jnp.transpose(logits.reshape(T, B, -1), (1, 0, 2))


# ----------------------------------------------------------------------------
# Demo / correctness check
# ----------------------------------------------------------------------------
if __name__ == "__main__":
    B, T, IN_DIM, HIDDEN, N_LAYER, N_CLASSES = 2, 8, 8, 32, 2, 5

    key = jax.random.PRNGKey(0)
    key, kx, kp = jax.random.split(key, 3)
    x = jax.random.normal(kx, (B, T, IN_DIM), jnp.float32)
    params = init_params(kp, IN_DIM, HIDDEN, N_LAYER, N_CLASSES)
    pparams = pad_params(params, IN_DIM, HIDDEN, N_CLASSES)

    out = jax.block_until_ready(gru_res_forward(x, pparams, N_CLASSES))
    assert out.shape == (B, T, N_CLASSES)

    # tight check vs a reference that mirrors the kernel's bf16 matmul inputs
    ref_m = jax.block_until_ready(gru_res_forward_ref(x, params,
                                                      match_bf16=True))
    assert jnp.allclose(out, ref_m, atol=5e-3, rtol=5e-3), \
        "mismatch vs matched (bf16-input) reference"

    # loose sanity check vs the pure-f32 PyTorch-semantics reference
    ref_f = jax.block_until_ready(gru_res_forward_ref(x, params,
                                                      match_bf16=False))
    assert jnp.allclose(out, ref_f, atol=5e-2, rtol=5e-2), \
        "mismatch vs f32 reference"

    print("KERNEL_OK")
</pallas_src>

<mosaic_0001>
module attributes {stable_mosaic.version = 11 : i64} {
  func.func @_proj_kernel_single(%arg0: i32, %arg1: memref<128x128xbf16, #tpu.memory_space<vmem>>, %arg2: memref<2x128x384xbf16, #tpu.memory_space<vmem>>, %arg3: memref<2x1x384xf32, #tpu.memory_space<vmem>>, %arg4: memref<128x384xf32, #tpu.memory_space<vmem>>, %arg5: memref<128x384xf32, #tpu.memory_space<vmem>>) attributes {dimension_semantics = [#tpu.dimension_semantics<parallel>], iteration_bounds = array<i64: 1>, scalar_prefetch = 0 : i64, scratch_operands = 0 : i64, tpu.core_type = #tpu.core_type<tc>, window_params = [{transform_indices = @transform_0, window_bounds = array<i64: 128, 128>}, {pipeline_mode = #tpu.pipeline_mode<synchronous>, transform_indices = @transform_1, window_bounds = array<i64: 2, 128, 384>}, {pipeline_mode = #tpu.pipeline_mode<synchronous>, transform_indices = @transform_2, window_bounds = array<i64: 2, 1, 384>}, {transform_indices = @transform_3, window_bounds = array<i64: 128, 384>}, {transform_indices = @transform_4, window_bounds = array<i64: 128, 384>}]} {
    %c0 = arith.constant 0 : index
    %c0_0 = arith.constant 0 : index
    %0 = vector.load %arg1[%c0, %c0_0] : memref<128x128xbf16, #tpu.memory_space<vmem>>, vector<128x128xbf16>
    %c0_1 = arith.constant 0 : index
    %c0_2 = arith.constant 0 : index
    %c0_3 = arith.constant 0 : index
    %1 = vector.load %arg2[%c0_1, %c0_2, %c0_3] : memref<2x128x384xbf16, #tpu.memory_space<vmem>>, vector<1x128x384xbf16>
    %2 = vector.shape_cast %1 : vector<1x128x384xbf16> to vector<128x384xbf16>
    %cst = arith.constant dense<0.000000e+00> : vector<128x384xf32>
    %3 = tpu.matmul %0, %2, %cst {dimension_numbers = #tpu.dot_dimension_numbers<[1], [0], [0], [1], [0, 0, 1, 1], [], []>} : vector<128x128xbf16>, vector<128x384xbf16>, vector<128x384xf32> -> vector<128x384xf32>
    %c0_4 = arith.constant 0 : index
    %c0_5 = arith.constant 0 : index
    %c0_6 = arith.constant 0 : index
    %4 = vector.load %arg3[%c0_4, %c0_5, %c0_6] : memref<2x1x384xf32, #tpu.memory_space<vmem>>, vector<1x1x384xf32>
    %5 = vector.shape_cast %4 : vector<1x1x384xf32> to vector<1x384xf32>
    %6 = vector.broadcast %5 : vector<1x384xf32> to vector<128x384xf32>
    %7 = arith.addf %3, %6 : vector<128x384xf32>
    %c0_7 = arith.constant 0 : index
    %c0_8 = arith.constant 0 : index
    %8 = vector.load %arg4[%c0_7, %c0_8] : memref<128x384xf32, #tpu.memory_space<vmem>>, vector<128x384xf32>
    tpu.vector_store %arg4[%c0_7, %c0_8], %7 {strides = array<i32>} : memref<128x384xf32, #tpu.memory_space<vmem>>, vector<128x384xf32>,
    %c1 = arith.constant 1 : index
    %c0_9 = arith.constant 0 : index
    %c0_10 = arith.constant 0 : index
    %9 = vector.load %arg2[%c1, %c0_9, %c0_10] : memref<2x128x384xbf16, #tpu.memory_space<vmem>>, vector<1x128x384xbf16>
    %10 = vector.shape_cast %9 : vector<1x128x384xbf16> to vector<128x384xbf16>
    %cst_11 = arith.constant dense<0.000000e+00> : vector<128x384xf32>
    %11 = tpu.matmul %0, %10, %cst_11 {dimension_numbers = #tpu.dot_dimension_numbers<[1], [0], [0], [1], [0, 0, 1, 1], [], []>} : vector<128x128xbf16>, vector<128x384xbf16>, vector<128x384xf32> -> vector<128x384xf32>
    %c1_12 = arith.constant 1 : index
    %c0_13 = arith.constant 0 : index
    %c0_14 = arith.constant 0 : index
    %12 = vector.load %arg3[%c1_12, %c0_13, %c0_14] : memref<2x1x384xf32, #tpu.memory_space<vmem>>, vector<1x1x384xf32>
    %13 = vector.shape_cast %12 : vector<1x1x384xf32> to vector<1x384xf32>
    %14 = vector.broadcast %13 : vector<1x384xf32> to vector<128x384xf32>
    %15 = arith.addf %11, %14 : vector<128x384xf32>
    %c0_15 = arith.constant 0 : index
    %c0_16 = arith.constant 0 : index
    %16 = vector.load %arg5[%c0_15, %c0_16] : memref<128x384xf32, #tpu.memory_space<vmem>>, vector<128x384xf32>
    tpu.vector_store %arg5[%c0_15, %c0_16], %15 {strides = array<i32>} : memref<128x384xf32, #tpu.memory_space<vmem>>, vector<128x384xf32>,
    return
  }
  func.func @transform_0(%arg0: i32) -> (i32, i32) {
    %c0_i32 = arith.constant 0 : i32
    %c0_i32_0 = arith.constant 0 : i32
    return %arg0, %c0_i32 : i32, i32
  }
  func.func @transform_1(%arg0: i32) -> (i32, i32, i32) {
    %c0_i32 = arith.constant 0 : i32
    %c0_i32_0 = arith.constant 0 : i32
    %c0_i32_1 = arith.constant 0 : i32
    %c0_i32_2 = arith.constant 0 : i32
    return %c0_i32, %c0_i32_0, %c0_i32_1 : i32, i32, i32
  }
  func.func @transform_2(%arg0: i32) -> (i32, i32, i32) {
    %c0_i32 = arith.constant 0 : i32
    %c0_i32_0 = arith.constant 0 : i32
    %c0_i32_1 = arith.constant 0 : i32
    %c0_i32_2 = arith.constant 0 : i32
    return %c0_i32, %c0_i32_0, %c0_i32_1 : i32, i32, i32
  }
  func.func @transform_3(%arg0: i32) -> (i32, i32) {
    %c0_i32 = arith.constant 0 : i32
    %c0_i32_0 = arith.constant 0 : i32
    return %arg0, %c0_i32 : i32, i32
  }
  func.func @transform_4(%arg0: i32) -> (i32, i32) {
    %c0_i32 = arith.constant 0 : i32
    %c0_i32_0 = arith.constant 0 : i32
    return %arg0, %c0_i32 : i32, i32
  }
}

</mosaic_0001>

<bundles_post_ra>
// kernel: tpu_custom_call.1
= control target key start
LH: loop header
LB: loop body
LE: loop exit
PB: predicated region body
PF: predicated region fallthrough
CT: control target
= control target key end

     0   :  { %10 = vsyncpa [#allocation3], 0  ;;  %s1627_s0 = inlined_call_operand.hbm [shape: bf16[128,128], index: 0, kind: input, shape index: {}]   ;;  %s1628_s1 = inlined_call_operand.hbm [shape: bf16[2,128,384], index: 1, kind: input, shape index: {}]   ;;  %s1629_s2 = inlined_call_operand.vmem [shape: f32[2,1,384], index: 2, kind: input, shape index: {}]   ;;  %s1630_s3 = inlined_call_operand.hbm [shape: f32[128,384], index: 3, kind: output, shape index: {0}]   ;;  %s1631_s4 = inlined_call_operand.hbm [shape: f32[128,384], index: 4, kind: output, shape index: {1}]  }
   0x1   :  { %11 = vsyncpa [#allocation6], 0 }
   0x2   :  { %12 = vsyncpa [#allocation4], 0 }
   0x3   :  { %13 = vsyncpa [#allocation9], 0  ;;  %s1349_s15 = smov [#allocation2]   ;;  %s1253_s19 = scalar_lea.hbm %s1627_s0, 1024 }
   0x4   :  { %s19_s16 = sshll.u32 %s1349_s15, 4  ;;  %p1254_p0 = scmp.ne.s32.totalorder %s1627_s0, %s1253_s19  ;;  %s20_s16 = int_to_ptr.vmem [resolvable:$true] %s19_s16 }
   0x5   :  { %p1257_p1 = scmp.lt.u32.totalorder %s1253_s19, %s1627_s0 }
   0x7   :  { %p1259_p2 = pnand %p1257_p1, %p1254_p0 }
   0x9   :  { %1262 = shalt.err (!%p1259_p2)
}
   0xa   :  { %s1263_s24 = scalar_lea.vmem %s20_s16, 1024  ;;  %p1268_p4 = scmp.lt.s32.totalorder %s20_s16, %s20_s16 }
   0xb   :  { %p1264_p3 = scmp.ne.s32.totalorder %s20_s16, %s1263_s24  ;;  %p1269_p5 = scmp.lt.s32.totalorder %s1263_s24, %s1263_s24 }
   0xd   :  { %p1270_p6 = por %p1269_p5, %p1268_p4 }
   0xf   :  { %p1271_p7 = pnand %p1270_p6, %p1264_p3 }
  0x11   :  { %1274 = shalt.err (!%p1271_p7)
}
  0x12   :  { %s1350_s25 = smov 64   ;;  %s1351_s26 = smov 4  }
  0x13   :  { %25 = dma.hbm_to_vmem [thread:$0]  %s1627_s0, 1024, %s20_s16, [#allocation3], %s1350_s25, %s1350_s25, %s1351_s26  }
  0x14   :  { %s1352_s29 = smov [#allocation5]   ;;  %s1275_s7 = scalar_lea.hbm %s1628_s1, 6144 }
  0x15   :  { %s31_s30 = sshll.u32 %s1352_s29, 4  ;;  %p1276_p8 = scmp.ne.s32.totalorder %s1628_s1, %s1275_s7  ;;  %s32_s30 = int_to_ptr.vmem [resolvable:$true] %s31_s30 }
  0x16   :  { %p1279_p9 = scmp.lt.u32.totalorder %s1275_s7, %s1628_s1 }
  0x18   :  { %p1281_p10 = pnand %p1279_p9, %p1276_p8 }
  0x1a   :  { %1284 = shalt.err (!%p1281_p10)
}
  0x1b   :  { %s1285_s12 = scalar_lea.vmem %s32_s30, 6144  ;;  %p1290_p12 = scmp.lt.s32.totalorder %s32_s30, %s32_s30 }
  0x1c   :  { %p1286_p11 = scmp.ne.s32.totalorder %s32_s30, %s1285_s12  ;;  %p1291_p13 = scmp.lt.s32.totalorder %s1285_s12, %s1285_s12 }
  0x1e   :  { %p1292_p0 = por %p1291_p13, %p1290_p12 }
  0x20   :  { %p1293_p1 = pnand %p1292_p0, %p1286_p11 }
  0x22   :  { %1296 = shalt.err (!%p1293_p1)
}
  0x23   :  { %s1353_s0 = smov 192   ;;  %s1354_s13 = smov 12  }
  0x24   :  { %37 = dma.hbm_to_vmem [thread:$0]  %s1628_s1, 6144, %s32_s30, [#allocation6], %s1353_s0, %s1353_s0, %s1354_s13  }
  0x25   :  { %1341 = dma.done.wait [#allocation3], 1024  }
  0x26   :  { %1342 = vsyncadd [#allocation3], 4294966272 }
  0x27   :  { %1343 = dma.done.wait [#allocation6], 6144  }
  0x28   :  { %1344 = vsyncadd [#allocation6], 4294961152  ;;  %v1355_v0 = vmov 0   ;;  %v1181_v1 = vld [vmem:[#allocation5 + $0x4] ss:$12 sps:$4 sm:$0xff]   ;;  %v1413_v28 = vld [vmem:[#allocation2 + $0x8] sm:$0xff]   ;;  %v97_v57 = vlaneseq }
  0x29   :  { %320 = vmatprep.mubr.bf16.mxu0 %v1355_v0  ;;  %v1183_v2 = vld [vmem:[#allocation5 + $0x8] ss:$12 sps:$4 sm:$0xff]   ;;  %288 = vmatprep.subr.bf16.mxu0 %v1181_v1  ;;  %v1184_v3 = vld [vmem:[#allocation5] ss:$12 sps:$4 sm:$0xff]   ;;  %v1188_v6 = vld [vmem:[#allocation5 + $0x18] ss:$12 sps:$4 sm:$0xff]  }
  0x2a   :  { %1106 = vmatprep.subr.bf16.mxu1 %v1183_v2  ;;  %v1185_v4 = vld [vmem:[#allocation5 + $0x1c] ss:$12 sps:$4 sm:$0xff]   ;;  %289 = vmatpush1.bf16.msra.mxu0 %v1184_v3  ;;  %v1187_v5 = vld [vmem:[#allocation5 + $0x20] ss:$12 sps:$4 sm:$0xff]   ;;  %v1191_v8 = vld [vmem:[#allocation5 + $0x38] ss:$12 sps:$4 sm:$0xff]  }
  0x2b   :  { %1107 = vmatpush3.bf16.msra.mxu1 %v1183_v2  ;;  %290 = vmatprep.subr.bf16.mxu0 %v1185_v4  ;;  %v1189_v7 = vld [vmem:[#allocation5 + $0x34] ss:$12 sps:$4 sm:$0xff]   ;;  %v1192_v9 = vld [vmem:[#allocation5 + $0x30] ss:$12 sps:$4 sm:$0xff]   ;;  %v1193_v10 = vld [vmem:[#allocation5 + $0x4c] ss:$12 sps:$4 sm:$0xff]  }
  0x2c   :  { %1108 = vmatprep.subr.bf16.mxu1 %v1187_v5  ;;  %v1195_v11 = vld [vmem:[#allocation5 + $0x50] ss:$12 sps:$4 sm:$0xff]   ;;  %v1196_v12 = vld [vmem:[#allocation5 + $0x48] ss:$12 sps:$4 sm:$0xff]   ;;  %v1200_v15 = vld [vmem:[#allocation5 + $0x60] ss:$12 sps:$4 sm:$0xff]  }
  0x2d   :  { %v1197_v13 = vld [vmem:[#allocation5 + $0x64] ss:$12 sps:$4 sm:$0xff]   ;;  %v1199_v14 = vld [vmem:[#allocation5 + $0x68] ss:$12 sps:$4 sm:$0xff]   ;;  %v1203_v17 = vld [vmem:[#allocation5 + $0x80] ss:$12 sps:$4 sm:$0xff]  }
  0x2e   :  { %291 = vmatpush1.bf16.msra.mxu0 %v1188_v6  ;;  %v1201_v16 = vld [vmem:[#allocation5 + $0x7c] ss:$12 sps:$4 sm:$0xff]   ;;  %v1410_v18 = vld [vmem:[#allocation2] sm:$0xff]   ;;  %v1209_v23 = vld [vmem:[#allocation5 + $0xac] ss:$12 sps:$4 sm:$0xff]   ;;  %v1461_v58 = vshrl.u32 %v97_v57, 7 }
  0x2f   :  { %1109 = vmatpush3.bf16.msra.mxu1 %v1187_v5  ;;  %292 = vmatprep.subr.bf16.mxu0 %v1189_v7  ;;  %v1204_v19 = vld [vmem:[#allocation5 + $0x78] ss:$12 sps:$4 sm:$0xff]   ;;  %v1205_v20 = vld [vmem:[#allocation5 + $0x94] ss:$12 sps:$4 sm:$0xff]   ;;  %v1208_v22 = vld [vmem:[#allocation5 + $0x90] ss:$12 sps:$4 sm:$0xff]  }
  0x30   :  { %1110 = vmatprep.subr.bf16.mxu1 %v1191_v8  ;;  %v1207_v21 = vld [vmem:[#allocation5 + $0x98] ss:$12 sps:$4 sm:$0xff]   ;;  %1122 = vmatprep.mubr.bf16.mxu1 %v1410_v18  ;;  %v1211_v24 = vld [vmem:[#allocation5 + $0xb0] ss:$12 sps:$4 sm:$0xff]   ;;  %v1212_v25 = vld [vmem:[#allocation5 + $0xa8] ss:$12 sps:$4 sm:$0xff]  }
  0x31   :  { %v1217_v26 = vld [vmem:[#allocation5 + $0xc4] ss:$12 sps:$4 sm:$0xff]   ;;  %v1218_v27 = vld [vmem:[#allocation5 + $0xc8] ss:$12 sps:$4 sm:$0xff]   ;;  %v1215_v29 = vld [vmem:[#allocation5 + $0xc0] ss:$12 sps:$4 sm:$0xff]  }
  0x32   :  { %293 = vmatpush1.bf16.msra.mxu0 %v1192_v9  ;;  %v1221_v30 = vld [vmem:[#allocation5 + $0xdc] ss:$12 sps:$4 sm:$0xff]   ;;  %v1415_v31 = vld [vmem:[#allocation2 + $0x10] sm:$0xff]   ;;  %v1227_v32 = vld [vmem:[#allocation5 + $0xe0] ss:$12 sps:$4 sm:$0xff]   ;;  %v99_v59 = vsub.s32 0, %v1461_v58 }
  0x33   :  { %1111 = vmatpush3.bf16.msra.mxu1 %v1191_v8  ;;  %294 = vmatprep.subr.bf16.mxu0 %v1193_v10  ;;  %v1219_v33 = vld [vmem:[#allocation5 + $0xd8] ss:$12 sps:$4 sm:$0xff]   ;;  %v1226_v34 = vld [vmem:[#allocation5 + $0xf4] ss:$12 sps:$4 sm:$0xff]   ;;  %v1224_v37 = vld [vmem:[#allocation5 + $0xf0] ss:$12 sps:$4 sm:$0xff]  }
  0x34   :  { %1112 = vmatprep.subr.bf16.mxu1 %v1195_v11  ;;  %v1236_v35 = vld [vmem:[#allocation5 + $0xf8] ss:$12 sps:$4 sm:$0xff]   ;;  %v1245_v40 = vld [vmem:[#allocation5 + $0x110] ss:$12 sps:$4 sm:$0xff]   ;;  %v1228_v41 = vld [vmem:[#allocation5 + $0x108] ss:$12 sps:$4 sm:$0xff]  }
  0x35   :  { %v1421_v36 = vld [vmem:[#allocation2 + $0x18] sm:$0xff]   ;;  %v1423_v39 = vld [vmem:[#allocation2 + $0x20] sm:$0xff]   ;;  %v1429_v43 = vld [vmem:[#allocation2 + $0x28] sm:$0xff]   ;;  %v107_v60 = vsub.s32 2, %v1461_v58  ;;  %v103_v62 = vsub.s32 1, %v1461_v58 }
  0x36   :  { %295 = vmatpush1.bf16.msra.mxu0 %v1196_v12  ;;  %v1230_v38 = vld [vmem:[#allocation5 + $0x10c] ss:$12 sps:$4 sm:$0xff]   ;;  %v1235_v42 = vld [vmem:[#allocation5 + $0x124] ss:$12 sps:$4 sm:$0xff]   ;;  %v1239_v45 = vld [vmem:[#allocation5 + $0x13c] ss:$12 sps:$4 sm:$0xff]  }
  0x37   :  { %1113 = vmatpush3.bf16.msra.mxu1 %v1195_v11  ;;  %296 = vmatprep.subr.bf16.mxu0 %v1197_v13  ;;  %v1233_v44 = vld [vmem:[#allocation5 + $0x120] ss:$12 sps:$4 sm:$0xff]   ;;  %v1240_v46 = vld [vmem:[#allocation2 + $0x30] sm:$0xff]   ;;  %v1237_v48 = vld [vmem:[#allocation5 + $0x138] ss:$12 sps:$4 sm:$0xff]  }
  0x38   :  { %1114 = vmatprep.subr.bf16.mxu1 %v1199_v14  ;;  %v1249_v47 = vld [vmem:[#allocation5 + $0x128] ss:$12 sps:$4 sm:$0xff]   ;;  %v1250_v49 = vld [vmem:[#allocation5 + $0x140] ss:$12 sps:$4 sm:$0xff]   ;;  %v1241_v51 = vld [vmem:[#allocation2 + $0x38] sm:$0xff]  }
  0x39   :  { %v1244_v50 = vld [vmem:[#allocation5 + $0x154] ss:$12 sps:$4 sm:$0xff]   ;;  %v1242_v52 = vld [vmem:[#allocation5 + $0x150] ss:$12 sps:$4 sm:$0xff]   ;;  %v1248_v53 = vld [vmem:[#allocation5 + $0x16c] ss:$12 sps:$4 sm:$0xff]  }
  0x3a   :  { %297 = vmatpush1.bf16.msra.mxu0 %v1200_v15  ;;  %v1251_v54 = vld [vmem:[#allocation5 + $0x158] ss:$12 sps:$4 sm:$0xff]   ;;  %v1246_v55 = vld [vmem:[#allocation5 + $0x168] ss:$12 sps:$4 sm:$0xff]   ;;  %v1252_v56 = vld [vmem:[#allocation5 + $0x170] ss:$12 sps:$4 sm:$0xff]  }
  0x3b   :  { %1115 = vmatpush3.bf16.msra.mxu1 %v1199_v14  ;;  %298 = vmatprep.subr.bf16.mxu0 %v1201_v16  ;;  %v95_v61 = vld [vmem:[%s1629_s2] sm:$0x7] }
  0x3c   :  { %1116 = vmatprep.subr.bf16.mxu1 %v1203_v17  ;;  %v1471_v63 = vrot.slane %v95_v61, %v99_v59  ;;  %v1479_v1 = vrot.slane %v95_v61, %v103_v62 }
  0x3e   :  { %299 = vmatpush1.bf16.msra.mxu0 %v1204_v19 }
  0x3f   :  { %1117 = vmatpush3.bf16.msra.mxu1 %v1203_v17  ;;  %300 = vmatprep.subr.bf16.mxu0 %v1205_v20 }
  0x40   :  { %1118 = vmatprep.subr.bf16.mxu1 %v1207_v21 }
  0x42   :  { %301 = vmatpush1.bf16.msra.mxu0 %v1208_v22 }
  0x43   :  { %1119 = vmatpush3.bf16.msra.mxu1 %v1207_v21  ;;  %302 = vmatprep.subr.bf16.mxu0 %v1209_v23 }
  0x44   :  { %1120 = vmatprep.subr.bf16.mxu1 %v1211_v24 }
  0x46   :  { %303 = vmatpush1.bf16.msra.mxu0 %v1212_v25 }
  0x47   :  { %1121 = vmatpush3.bf16.msra.mxu1 %v1211_v24  ;;  %1138 = vmatprep.subr.bf16.mxu0 %v1218_v27 }
  0x48   :  { %725 = vmatprep.subr.bf16.mxu1 %v1217_v26 }
  0x49   :  { %321 = vmatmul.mubr.bf16.vlgmr.msra.gmra.mrb[0].mxu0 %v1410_v18 }
  0x4a   :  { %1123 = vmatmul.mubr.bf16.vlgmr.msra.gmra.mrb[0].mxu1 %v1413_v28  ;;  %1139 = vmatpush3.bf16.msra.mxu0 %v1218_v27 }
  0x4b   :  { %726 = vmatpush1.bf16.msra.mxu1 %v1215_v29  ;;  %330 = vmatprep.mubr.bf16.mxu0 %v1355_v0 }
  0x4c   :  { %727 = vmatprep.subr.bf16.mxu1 %v1221_v30  ;;  %1126 = vmatprep.mubr.bf16.mxu1 %v1415_v31 }
  0x4d   :  { %1140 = vmatprep.subr.bf16.mxu0 %v1227_v32 }
  0x4e   :  { %1141 = vmatpush3.bf16.msra.mxu0 %v1227_v32 }
  0x4f   :  { %728 = vmatpush1.bf16.msra.mxu1 %v1219_v33  ;;  %1142 = vmatprep.subr.bf16.mxu0 %v1236_v35 }
  0x50   :  { %729 = vmatprep.subr.bf16.mxu1 %v1226_v34 }
  0x51   :  { %331 = vmatmul.mubr.bf16.gmra.mrb[4].mxu0 %v1413_v28 }
  0x52   :  { %1127 = vmatmul.mubr.bf16.gmra.mrb[4].mxu1 %v1421_v36  ;;  %340 = vmatprep.mubr.bf16.mxu0 %v1355_v0 }
  0x53   :  { %730 = vmatpush1.bf16.msra.mxu1 %v1224_v37  ;;  %1130 = vmatprep.mubr.bf16.mxu1 %v1423_v39 }
  0x54   :  { %731 = vmatprep.subr.bf16.mxu1 %v1230_v38  ;;  %1143 = vmatpush3.bf16.msra.mxu0 %v1236_v35 }
  0x55   :  { %1144 = vmatprep.subr.bf16.mxu0 %v1245_v40 }
  0x57   :  { %732 = vmatpush1.bf16.msra.mxu1 %v1228_v41 }
  0x58   :  { %733 = vmatprep.subr.bf16.mxu1 %v1235_v42  ;;  %1145 = vmatpush3.bf16.msra.mxu0 %v1245_v40 }
  0x59   :  { %341 = vmatmul.mubr.bf16.gmra.mrb[8].mxu0 %v1415_v31  ;;  %1146 = vmatprep.subr.bf16.mxu0 %v1249_v47 }
  0x5a   :  { %1131 = vmatmul.mubr.bf16.gmra.mrb[8].mxu1 %v1429_v43  ;;  %350 = vmatprep.mubr.bf16.mxu0 %v1355_v0 }
  0x5b   :  { %734 = vmatpush1.bf16.msra.mxu1 %v1233_v44  ;;  %1134 = vmatprep.mubr.bf16.mxu1 %v1240_v46 }
  0x5c   :  { %735 = vmatprep.subr.bf16.mxu1 %v1239_v45  ;;  %1147 = vmatpush3.bf16.msra.mxu0 %v1249_v47 }
  0x5d   :  { %1148 = vmatprep.subr.bf16.mxu0 %v1250_v49 }
  0x5f   :  { %736 = vmatpush1.bf16.msra.mxu1 %v1237_v48 }
  0x60   :  { %737 = vmatprep.subr.bf16.mxu1 %v1244_v50  ;;  %1149 = vmatpush3.bf16.msra.mxu0 %v1250_v49 }
  0x61   :  { %351 = vmatmul.mubr.bf16.gmra.mrb[12].mxu0 %v1421_v36  ;;  %1150 = vmatprep.subr.bf16.mxu0 %v1251_v54 }
  0x62   :  { %1135 = vmatmul.mubr.bf16.gmra.mrb[12].mxu1 %v1241_v51  ;;  %360 = vmatprep.mubr.bf16.mxu0 %v1355_v0 }
  0x63   :  { %738 = vmatpush1.bf16.msra.mxu1 %v1242_v52  ;;  %757 = vmatprep.mubr.bf16.mxu1 %v1355_v0 }
  0x64   :  { %739 = vmatprep.subr.bf16.mxu1 %v1248_v53  ;;  %1151 = vmatpush3.bf16.msra.mxu0 %v1251_v54 }
  0x65   :  { %1152 = vmatprep.subr.bf16.mxu0 %v1252_v56 }
  0x67   :  { %740 = vmatpush1.bf16.msra.mxu1 %v1246_v55 }
  0x68   :  { %1153 = vmatpush3.bf16.msra.mxu0 %v1252_v56 }
  0x69   :  { %361 = vmatmul.mubr.bf16.gmra.mrb[16].mxu0 %v1423_v39 }
  0x6a   :  { %758 = vmatmul.mubr.bf16.vlgmr.msra.gmra.mrb[16].mxu1 %v1410_v18  ;;  %370 = vmatprep.mubr.bf16.mxu0 %v1355_v0 }
  0x6b   :  { %767 = vmatprep.mubr.bf16.mxu1 %v1355_v0 }
  0x71   :  { %371 = vmatmul.mubr.bf16.gmra.mrb[20].mxu0 %v1429_v43 }
  0x72   :  { %768 = vmatmul.mubr.bf16.gmra.mrb[20].mxu1 %v1413_v28  ;;  %380 = vmatprep.mubr.bf16.mxu0 %v1355_v0 }
  0x73   :  { %777 = vmatprep.mubr.bf16.mxu1 %v1355_v0 }
  0x79   :  { %381 = vmatmul.mubr.bf16.gmra.mrb[24].mxu0 %v1240_v46 }
  0x7a   :  { %778 = vmatmul.mubr.bf16.gmra.mrb[24].mxu1 %v1415_v31  ;;  %390 = vmatprep.mubr.bf16.mxu0 %v1355_v0 }
  0x7b   :  { %787 = vmatprep.mubr.bf16.mxu1 %v1355_v0 }
  0x81   :  { %391 = vmatmul.mubr.bf16.gmra.mrb[28].mxu0 %v1241_v51 }
  0x82   :  { %788 = vmatmul.mubr.bf16.gmra.mrb[28].mxu1 %v1421_v36  ;;  %1154 = vmatprep.mubr.bf16.mxu0 %v1410_v18 }
  0x83   :  { %797 = vmatprep.mubr.bf16.mxu1 %v1355_v0 }
  0x89   :  { %1155 = vmatmul.mubr.bf16.vlgmr.msra.gmra.mrb[32].mxu0 %v1413_v28 }
  0x8a   :  { %798 = vmatmul.mubr.bf16.gmra.mrb[32].mxu1 %v1423_v39  ;;  %1158 = vmatprep.mubr.bf16.mxu0 %v1415_v31 }
  0x8b   :  { %807 = vmatprep.mubr.bf16.mxu1 %v1355_v0 }
  0x91   :  { %1159 = vmatmul.mubr.bf16.gmra.mrb[36].mxu0 %v1421_v36 }
  0x92   :  { %808 = vmatmul.mubr.bf16.gmra.mrb[36].mxu1 %v1429_v43  ;;  %1162 = vmatprep.mubr.bf16.mxu0 %v1423_v39 }
  0x93   :  { %817 = vmatprep.mubr.bf16.mxu1 %v1355_v0 }
  0x99   :  { %1163 = vmatmul.mubr.bf16.gmra.mrb[40].mxu0 %v1429_v43 }
  0x9a   :  { %818 = vmatmul.mubr.bf16.gmra.mrb[40].mxu1 %v1240_v46  ;;  %1166 = vmatprep.mubr.bf16.mxu0 %v1240_v46 }
  0x9b   :  { %827 = vmatprep.mubr.bf16.mxu1 %v1355_v0  ;;  %v1475_v0 = vrot.slane %v95_v61, %v107_v60 }
  0xa1   :  { %1167 = vmatmul.mubr.bf16.gmra.mrb[44].mxu0 %v1241_v51 }
  0xa2   :  { %828 = vmatmul.mubr.bf16.gmra.mrb[44].mxu1 %v1241_v51 }
 0x11c   :  { %v322_v2 = vpop.f32.mrb[0].mxu0 }
 0x11d   :  { %v1124_v3 = vpop.f32.mrb[0].mxu1  ;;  %v323_v4 = vadd.f32 %v322_v2, %v1471_v63  ;;  %v324_v6 = vpop.f32.mrb[1].mxu0 }
 0x11e   :  { %v444_v5 = vadd.f32 %v1124_v3, %v1475_v0  ;;  %v435_v7 = vpop.f32.mrb[1].mxu1  ;;  %v325_v8 = vadd.f32 %v324_v6, %v1479_v1  ;;  %v326_v10 = vpop.f32.mrb[2].mxu0  ;;  %v1512_v3 = vld [vmem:[%s1629_s2 + $0x3] sm:$0x7]  ;;  %s1356_s2 = smov [#allocation7]  }
 0x11f   :  { %v436_v9 = vadd.f32 %v435_v7, %v1475_v0  ;;  %v1125_v11 = vpop.f32.mrb[2].mxu1  ;;  %498 = vst [vmem:[#allocation7] sm:$0xff] %v323_v4  ;;  %v327_v12 = vadd.f32 %v326_v10, %v1471_v63  ;;  %v328_v14 = vpop.f32.mrb[3].mxu0  ;;  %v1521_v10 = vrot.slane %v1512_v3, %v99_v59  ;;  %s988_s19 = sshll.u32 %s1356_s2, 4  ;;  %s989_s19 = int_to_ptr.vmem [resolvable:$true] %s988_s19 }
 0x120   :  { %506 = vst [vmem:[#allocation7 + $0x40] sm:$0xff] %v444_v5  ;;  %v447_v13 = vadd.f32 %v1125_v11, %v1475_v0  ;;  %v438_v15 = vpop.f32.mrb[3].mxu1  ;;  %499 = vst [vmem:[#allocation7 + $0x8] sm:$0xff] %v325_v8  ;;  %v329_v16 = vadd.f32 %v328_v14, %v1479_v1  ;;  %v1526_v11 = vrot.slane %v1512_v3, %v103_v62  ;;  %s1297_s20 = scalar_lea.vmem %s989_s19, 6144  ;;  %p1302_p3 = scmp.lt.s32.totalorder %s989_s19, %s989_s19 }
 0x121   :  { %500 = vst [vmem:[#allocation7 + $0x10] sm:$0xff] %v436_v9  ;;  %v439_v17 = vadd.f32 %v438_v15, %v1475_v0  ;;  %501 = vst [vmem:[#allocation7 + $0x18] sm:$0xff] %v327_v12  ;;  %p1298_p2 = scmp.ne.s32.totalorder %s989_s19, %s1297_s20  ;;  %p1303_p4 = scmp.lt.s32.totalorder %s1297_s20, %s1297_s20 }
 0x122   :  { %509 = vst [vmem:[#allocation7 + $0x58] sm:$0xff] %v447_v13  ;;  %502 = vst [vmem:[#allocation7 + $0x20] sm:$0xff] %v329_v16 }
 0x123   :  { %503 = vst [vmem:[#allocation7 + $0x28] sm:$0xff] %v439_v17  ;;  %p1304_p5 = por %p1303_p4, %p1302_p3 }
 0x124   :  { %v332_v18 = vpop.f32.mrb[4].mxu0 }
 0x125   :  { %v1128_v19 = vpop.f32.mrb[4].mxu1  ;;  %v333_v20 = vadd.f32 %v332_v18, %v1471_v63  ;;  %v334_v22 = vpop.f32.mrb[5].mxu0  ;;  %p1305_p6 = pnand %p1304_p5, %p1298_p2 }
 0x126   :  { %v460_v21 = vadd.f32 %v1128_v19, %v1475_v0  ;;  %v451_v23 = vpop.f32.mrb[5].mxu1  ;;  %v335_v24 = vadd.f32 %v334_v22, %v1479_v1  ;;  %v336_v26 = vpop.f32.mrb[6].mxu0 }
 0x127   :  { %v452_v25 = vadd.f32 %v451_v23, %v1475_v0  ;;  %v1129_v27 = vpop.f32.mrb[6].mxu1  ;;  %504 = vst [vmem:[#allocation7 + $0x30] sm:$0xff] %v333_v20  ;;  %v337_v28 = vadd.f32 %v336_v26, %v1471_v63  ;;  %v338_v30 = vpop.f32.mrb[7].mxu0 }
 0x128   :  { %518 = vst [vmem:[#allocation7 + $0xa0] sm:$0xff] %v460_v21  ;;  %v463_v29 = vadd.f32 %v1129_v27, %v1475_v0  ;;  %v454_v31 = vpop.f32.mrb[7].mxu1  ;;  %505 = vst [vmem:[#allocation7 + $0x38] sm:$0xff] %v335_v24  ;;  %v339_v32 = vadd.f32 %v338_v30, %v1479_v1 }
 0x129   :  { %512 = vst [vmem:[#allocation7 + $0x70] sm:$0xff] %v452_v25  ;;  %v455_v33 = vadd.f32 %v454_v31, %v1475_v0  ;;  %507 = vst [vmem:[#allocation7 + $0x48] sm:$0xff] %v337_v28 }
 0x12a   :  { %521 = vst [vmem:[#allocation7 + $0xb8] sm:$0xff] %v463_v29  ;;  %508 = vst [vmem:[#allocation7 + $0x50] sm:$0xff] %v339_v32 }
 0x12b   :  { %515 = vst [vmem:[#allocation7 + $0x88] sm:$0xff] %v455_v33 }
 0x12c   :  { %v342_v34 = vpop.f32.mrb[8].mxu0 }
 0x12d   :  { %v1132_v35 = vpop.f32.mrb[8].mxu1  ;;  %v343_v36 = vadd.f32 %v342_v34, %v1471_v63  ;;  %v344_v38 = vpop.f32.mrb[9].mxu0 }
 0x12e   :  { %v476_v37 = vadd.f32 %v1132_v35, %v1475_v0  ;;  %v467_v39 = vpop.f32.mrb[9].mxu1  ;;  %v345_v40 = vadd.f32 %v344_v38, %v1479_v1  ;;  %v346_v42 = vpop.f32.mrb[10].mxu0 }
 0x12f   :  { %v468_v41 = vadd.f32 %v467_v39, %v1475_v0  ;;  %v1133_v43 = vpop.f32.mrb[10].mxu1  ;;  %510 = vst [vmem:[#allocation7 + $0x60] sm:$0xff] %v343_v36  ;;  %v347_v44 = vadd.f32 %v346_v42, %v1471_v63  ;;  %v348_v46 = vpop.f32.mrb[11].mxu0 }
 0x130   :  { %530 = vst [vmem:[#allocation7 + $0x100] sm:$0xff] %v476_v37  ;;  %v479_v45 = vadd.f32 %v1133_v43, %v1475_v0  ;;  %v470_v47 = vpop.f32.mrb[11].mxu1  ;;  %511 = vst [vmem:[#allocation7 + $0x68] sm:$0xff] %v345_v40  ;;  %v349_v48 = vadd.f32 %v348_v46, %v1479_v1 }
 0x131   :  { %524 = vst [vmem:[#allocation7 + $0xd0] sm:$0xff] %v468_v41  ;;  %v471_v49 = vadd.f32 %v470_v47, %v1475_v0  ;;  %513 = vst [vmem:[#allocation7 + $0x78] sm:$0xff] %v347_v44 }
 0x132   :  { %533 = vst [vmem:[#allocation7 + $0x118] sm:$0xff] %v479_v45  ;;  %514 = vst [vmem:[#allocation7 + $0x80] sm:$0xff] %v349_v48 }
 0x133   :  { %527 = vst [vmem:[#allocation7 + $0xe8] sm:$0xff] %v471_v49 }
 0x134   :  { %v352_v50 = vpop.f32.mrb[12].mxu0 }
 0x135   :  { %v1136_v51 = vpop.f32.mrb[12].mxu1  ;;  %v353_v52 = vadd.f32 %v352_v50, %v1471_v63  ;;  %v354_v54 = vpop.f32.mrb[13].mxu0 }
 0x136   :  { %v492_v53 = vadd.f32 %v1136_v51, %v1475_v0  ;;  %v483_v55 = vpop.f32.mrb[13].mxu1  ;;  %v355_v56 = vadd.f32 %v354_v54, %v1479_v1  ;;  %v356_v61 = vpop.f32.mrb[14].mxu0 }
 0x137   :  { %v484_v57 = vadd.f32 %v483_v55, %v1475_v0  ;;  %v1137_v2 = vpop.f32.mrb[14].mxu1  ;;  %516 = vst [vmem:[#allocation7 + $0x90] sm:$0xff] %v353_v52  ;;  %v357_v4 = vadd.f32 %v356_v61, %v1471_v63  ;;  %v358_v6 = vpop.f32.mrb[15].mxu0 }
 0x138   :  { %542 = vst [vmem:[#allocation7 + $0x160] sm:$0xff] %v492_v53  ;;  %v495_v5 = vadd.f32 %v1137_v2, %v1475_v0  ;;  %v486_v7 = vpop.f32.mrb[15].mxu1  ;;  %517 = vst [vmem:[#allocation7 + $0x98] sm:$0xff] %v355_v56  ;;  %v359_v8 = vadd.f32 %v358_v6, %v1479_v1 }
 0x139   :  { %536 = vst [vmem:[#allocation7 + $0x130] sm:$0xff] %v484_v57  ;;  %v487_v9 = vadd.f32 %v486_v7, %v1475_v0  ;;  %519 = vst [vmem:[#allocation7 + $0xa8] sm:$0xff] %v357_v4 }
 0x13a   :  { %545 = vst [vmem:[#allocation7 + $0x178] sm:$0xff] %v495_v5  ;;  %520 = vst [vmem:[#allocation7 + $0xb0] sm:$0xff] %v359_v8 }
 0x13b   :  { %539 = vst [vmem:[#allocation7 + $0x148] sm:$0xff] %v487_v9 }
 0x13c   :  { %v362_v12 = vpop.f32.mrb[16].mxu0 }
 0x13d   :  { %v759_v13 = vpop.f32.mrb[16].mxu1  ;;  %v363_v14 = vadd.f32 %v362_v12, %v1471_v63  ;;  %v364_v15 = vpop.f32.mrb[17].mxu0 }
 0x13e   :  { %v760_v0 = vadd.f32 %v759_v13, %v1521_v10  ;;  %v761_v16 = vpop.f32.mrb[17].mxu1  ;;  %v365_v17 = vadd.f32 %v364_v15, %v1479_v1  ;;  %v366_v18 = vpop.f32.mrb[18].mxu0 }
 0x13f   :  { %v762_v59 = vadd.f32 %v761_v16, %v1526_v11  ;;  %v763_v19 = vpop.f32.mrb[18].mxu1  ;;  %522 = vst [vmem:[#allocation7 + $0xc0] sm:$0xff] %v363_v14  ;;  %v367_v20 = vadd.f32 %v366_v18, %v1471_v63  ;;  %v368_v21 = vpop.f32.mrb[19].mxu0 }
 0x140   :  { %935 = vst [vmem:[#allocation8] sm:$0xff] %v760_v0  ;;  %v764_v62 = vadd.f32 %v763_v19, %v1521_v10  ;;  %v765_v22 = vpop.f32.mrb[19].mxu1  ;;  %523 = vst [vmem:[#allocation7 + $0xc8] sm:$0xff] %v365_v17  ;;  %v369_v23 = vadd.f32 %v368_v21, %v1479_v1 }
 0x141   :  { %936 = vst [vmem:[#allocation8 + $0x8] sm:$0xff] %v762_v59  ;;  %v766_v24 = vadd.f32 %v765_v22, %v1526_v11  ;;  %525 = vst [vmem:[#allocation7 + $0xd8] sm:$0xff] %v367_v20  ;;  %v1563_v59 = vrot.slane %v1512_v3, %v107_v60 }
 0x142   :  { %938 = vst [vmem:[#allocation8 + $0x18] sm:$0xff] %v764_v62  ;;  %526 = vst [vmem:[#allocation7 + $0xe0] sm:$0xff] %v369_v23 }
 0x143   :  { %939 = vst [vmem:[#allocation8 + $0x20] sm:$0xff] %v766_v24 }
 0x144   :  { %v372_v25 = vpop.f32.mrb[20].mxu0 }
 0x145   :  { %v769_v26 = vpop.f32.mrb[20].mxu1  ;;  %v373_v27 = vadd.f32 %v372_v25, %v1471_v63  ;;  %v374_v29 = vpop.f32.mrb[21].mxu0 }
 0x146   :  { %v770_v28 = vadd.f32 %v769_v26, %v1521_v10  ;;  %v771_v30 = vpop.f32.mrb[21].mxu1  ;;  %v375_v31 = vadd.f32 %v374_v29, %v1479_v1  ;;  %v376_v33 = vpop.f32.mrb[22].mxu0 }
 0x147   :  { %v772_v32 = vadd.f32 %v771_v30, %v1526_v11  ;;  %v773_v34 = vpop.f32.mrb[22].mxu1  ;;  %528 = vst [vmem:[#allocation7 + $0xf0] sm:$0xff] %v373_v27  ;;  %v377_v35 = vadd.f32 %v376_v33, %v1471_v63  ;;  %v378_v37 = vpop.f32.mrb[23].mxu0 }
 0x148   :  { %941 = vst [vmem:[#allocation8 + $0x30] sm:$0xff] %v770_v28  ;;  %v774_v36 = vadd.f32 %v773_v34, %v1521_v10  ;;  %v775_v38 = vpop.f32.mrb[23].mxu1  ;;  %529 = vst [vmem:[#allocation7 + $0xf8] sm:$0xff] %v375_v31  ;;  %v379_v39 = vadd.f32 %v378_v37, %v1479_v1 }
 0x149   :  { %942 = vst [vmem:[#allocation8 + $0x38] sm:$0xff] %v772_v32  ;;  %v776_v40 = vadd.f32 %v775_v38, %v1526_v11  ;;  %531 = vst [vmem:[#allocation7 + $0x108] sm:$0xff] %v377_v35 }
 0x14a   :  { %944 = vst [vmem:[#allocation8 + $0x48] sm:$0xff] %v774_v36  ;;  %532 = vst [vmem:[#allocation7 + $0x110] sm:$0xff] %v379_v39 }
 0x14b   :  { %945 = vst [vmem:[#allocation8 + $0x50] sm:$0xff] %v776_v40 }
 0x14c   :  { %v382_v41 = vpop.f32.mrb[24].mxu0 }
 0x14d   :  { %v779_v42 = vpop.f32.mrb[24].mxu1  ;;  %v383_v43 = vadd.f32 %v382_v41, %v1471_v63  ;;  %v384_v45 = vpop.f32.mrb[25].mxu0 }
 0x14e   :  { %v780_v44 = vadd.f32 %v779_v42, %v1521_v10  ;;  %v781_v46 = vpop.f32.mrb[25].mxu1  ;;  %v385_v47 = vadd.f32 %v384_v45, %v1479_v1  ;;  %v386_v49 = vpop.f32.mrb[26].mxu0 }
 0x14f   :  { %v782_v48 = vadd.f32 %v781_v46, %v1526_v11  ;;  %v783_v50 = vpop.f32.mrb[26].mxu1  ;;  %534 = vst [vmem:[#allocation7 + $0x120] sm:$0xff] %v383_v43  ;;  %v387_v51 = vadd.f32 %v386_v49, %v1471_v63  ;;  %v388_v53 = vpop.f32.mrb[27].mxu0 }
 0x150   :  { %947 = vst [vmem:[#allocation8 + $0x60] sm:$0xff] %v780_v44  ;;  %v784_v52 = vadd.f32 %v783_v50, %v1521_v10  ;;  %v785_v54 = vpop.f32.mrb[27].mxu1  ;;  %535 = vst [vmem:[#allocation7 + $0x128] sm:$0xff] %v385_v47  ;;  %v389_v55 = vadd.f32 %v388_v53, %v1479_v1 }
 0x151   :  { %948 = vst [vmem:[#allocation8 + $0x68] sm:$0xff] %v782_v48  ;;  %v786_v56 = vadd.f32 %v785_v54, %v1526_v11  ;;  %537 = vst [vmem:[#allocation7 + $0x138] sm:$0xff] %v387_v51 }
 0x152   :  { %950 = vst [vmem:[#allocation8 + $0x78] sm:$0xff] %v784_v52  ;;  %538 = vst [vmem:[#allocation7 + $0x140] sm:$0xff] %v389_v55 }
 0x153   :  { %951 = vst [vmem:[#allocation8 + $0x80] sm:$0xff] %v786_v56 }
 0x154   :  { %v392_v57 = vpop.f32.mrb[28].mxu0 }
 0x155   :  { %v789_v61 = vpop.f32.mrb[28].mxu1  ;;  %v393_v2 = vadd.f32 %v392_v57, %v1471_v63  ;;  %v394_v5 = vpop.f32.mrb[29].mxu0 }
 0x156   :  { %v790_v4 = vadd.f32 %v789_v61, %v1521_v10  ;;  %v791_v6 = vpop.f32.mrb[29].mxu1  ;;  %v395_v7 = vadd.f32 %v394_v5, %v1479_v1  ;;  %v396_v9 = vpop.f32.mrb[30].mxu0 }
 0x157   :  { %v792_v8 = vadd.f32 %v791_v6, %v1526_v11  ;;  %v793_v12 = vpop.f32.mrb[30].mxu1  ;;  %540 = vst [vmem:[#allocation7 + $0x150] sm:$0xff] %v393_v2  ;;  %v397_v13 = vadd.f32 %v396_v9, %v1471_v63  ;;  %v398_v0 = vpop.f32.mrb[31].mxu0 }
 0x158   :  { %953 = vst [vmem:[#allocation8 + $0x90] sm:$0xff] %v790_v4  ;;  %v794_v14 = vadd.f32 %v793_v12, %v1521_v10  ;;  %v795_v15 = vpop.f32.mrb[31].mxu1  ;;  %541 = vst [vmem:[#allocation7 + $0x158] sm:$0xff] %v395_v7  ;;  %v399_v16 = vadd.f32 %v398_v0, %v1479_v1 }
 0x159   :  { %954 = vst [vmem:[#allocation8 + $0x98] sm:$0xff] %v792_v8  ;;  %v796_v17 = vadd.f32 %v795_v15, %v1526_v11  ;;  %543 = vst [vmem:[#allocation7 + $0x168] sm:$0xff] %v397_v13 }
 0x15a   :  { %956 = vst [vmem:[#allocation8 + $0xa8] sm:$0xff] %v794_v14  ;;  %544 = vst [vmem:[#allocation7 + $0x170] sm:$0xff] %v399_v16 }
 0x15b   :  { %957 = vst [vmem:[#allocation8 + $0xb0] sm:$0xff] %v796_v17 }
 0x15c   :  { %1308 = shalt.err (!%p1305_p6)
}
 0x15d   :  { %s1309_s23 = scalar_lea.hbm %s1630_s3, 6144 }
 0x15e   :  { %p1310_p7 = scmp.ne.s32.totalorder %s1630_s3, %s1309_s23  ;;  %p1313_p8 = scmp.lt.u32.totalorder %s1309_s23, %s1630_s3 }
 0x160   :  { %p1315_p9 = pnand %p1313_p8, %p1310_p7 }
 0x162   :  { %1318 = shalt.err (!%p1315_p9)
}
 0x163   :  { %s1357_s28 = smov 384   ;;  %s1358_s29 = smov 24   ;;  %v799_v58 = vpop.f32.mrb[32].mxu1  ;;  %v1156_v60 = vpop.f32.mrb[32].mxu0 }
 0x164   :  { %994 = dma.vmem_to_hbm [thread:$0]  %s989_s19, 6144, %s1630_s3, [#allocation4], %s1357_s28, %s1357_s28, %s1358_s29   ;;  %v800_v63 = vadd.f32 %v799_v58, %v1521_v10  ;;  %v881_v1 = vadd.f32 %v1156_v60, %v1563_v59  ;;  %v801_v3 = vpop.f32.mrb[33].mxu1  ;;  %v872_v18 = vpop.f32.mrb[33].mxu0 }
 0x165   :  { %v802_v19 = vadd.f32 %v801_v3, %v1526_v11  ;;  %v873_v20 = vadd.f32 %v872_v18, %v1563_v59  ;;  %v803_v62 = vpop.f32.mrb[34].mxu1  ;;  %v1157_v21 = vpop.f32.mrb[34].mxu0  ;;  %s1359_s3 = smov [#allocation8]  }
 0x166   :  { %959 = vst [vmem:[#allocation8 + $0xc0] sm:$0xff] %v800_v63  ;;  %943 = vst [vmem:[#allocation8 + $0x40] sm:$0xff] %v881_v1  ;;  %v804_v22 = vadd.f32 %v803_v62, %v1521_v10  ;;  %v884_v23 = vadd.f32 %v1157_v21, %v1563_v59  ;;  %v805_v24 = vpop.f32.mrb[35].mxu1  ;;  %v875_v25 = vpop.f32.mrb[35].mxu0  ;;  %s1000_s6 = sshll.u32 %s1359_s3, 4  ;;  %s1001_s6 = int_to_ptr.vmem [resolvable:$true] %s1000_s6 }
 0x167   :  { %960 = vst [vmem:[#allocation8 + $0xc8] sm:$0xff] %v802_v19  ;;  %937 = vst [vmem:[#allocation8 + $0x10] sm:$0xff] %v873_v20  ;;  %v806_v26 = vadd.f32 %v805_v24, %v1526_v11  ;;  %v876_v27 = vadd.f32 %v875_v25, %v1563_v59  ;;  %v809_v28 = vpop.f32.mrb[36].mxu1  ;;  %v1160_v29 = vpop.f32.mrb[36].mxu0  ;;  %s1319_s7 = scalar_lea.vmem %s1001_s6, 6144  ;;  %p1324_p11 = scmp.lt.s32.totalorder %s1001_s6, %s1001_s6 }
 0x168   :  { %962 = vst [vmem:[#allocation8 + $0xd8] sm:$0xff] %v804_v22  ;;  %946 = vst [vmem:[#allocation8 + $0x58] sm:$0xff] %v884_v23  ;;  %v810_v30 = vadd.f32 %v809_v28, %v1521_v10  ;;  %v897_v31 = vadd.f32 %v1160_v29, %v1563_v59  ;;  %v811_v32 = vpop.f32.mrb[37].mxu1  ;;  %v888_v33 = vpop.f32.mrb[37].mxu0  ;;  %p1320_p10 = scmp.ne.s32.totalorder %s1001_s6, %s1319_s7  ;;  %p1325_p12 = scmp.lt.s32.totalorder %s1319_s7, %s1319_s7 }
 0x169   :  { %963 = vst [vmem:[#allocation8 + $0xe0] sm:$0xff] %v806_v26  ;;  %940 = vst [vmem:[#allocation8 + $0x28] sm:$0xff] %v876_v27  ;;  %v812_v34 = vadd.f32 %v811_v32, %v1526_v11  ;;  %v889_v35 = vadd.f32 %v888_v33, %v1563_v59  ;;  %v813_v36 = vpop.f32.mrb[38].mxu1  ;;  %v1161_v37 = vpop.f32.mrb[38].mxu0 }
 0x16a   :  { %965 = vst [vmem:[#allocation8 + $0xf0] sm:$0xff] %v810_v30  ;;  %955 = vst [vmem:[#allocation8 + $0xa0] sm:$0xff] %v897_v31  ;;  %v814_v38 = vadd.f32 %v813_v36, %v1521_v10  ;;  %v900_v39 = vadd.f32 %v1161_v37, %v1563_v59  ;;  %v815_v40 = vpop.f32.mrb[39].mxu1  ;;  %v891_v41 = vpop.f32.mrb[39].mxu0  ;;  %p1326_p13 = por %p1325_p12, %p1324_p11 }
 0x16b   :  { %966 = vst [vmem:[#allocation8 + $0xf8] sm:$0xff] %v812_v34  ;;  %949 = vst [vmem:[#allocation8 + $0x70] sm:$0xff] %v889_v35  ;;  %v816_v42 = vadd.f32 %v815_v40, %v1526_v11  ;;  %v892_v43 = vadd.f32 %v891_v41, %v1563_v59 }
 0x16c   :  { %968 = vst [vmem:[#allocation8 + $0x108] sm:$0xff] %v814_v38  ;;  %958 = vst [vmem:[#allocation8 + $0xb8] sm:$0xff] %v900_v39  ;;  %v1164_v45 = vpop.f32.mrb[40].mxu0  ;;  %p1327_p0 = pnand %p1326_p13, %p1320_p10 }
 0x16d   :  { %969 = vst [vmem:[#allocation8 + $0x110] sm:$0xff] %v816_v42  ;;  %952 = vst [vmem:[#allocation8 + $0x88] sm:$0xff] %v892_v43  ;;  %v819_v44 = vpop.f32.mrb[40].mxu1  ;;  %v913_v47 = vadd.f32 %v1164_v45, %v1563_v59  ;;  %v904_v49 = vpop.f32.mrb[41].mxu0 }
 0x16e   :  { %v820_v46 = vadd.f32 %v819_v44, %v1521_v10  ;;  %v821_v48 = vpop.f32.mrb[41].mxu1  ;;  %v905_v51 = vadd.f32 %v904_v49, %v1563_v59  ;;  %v1165_v53 = vpop.f32.mrb[42].mxu0 }
 0x16f   :  { %v822_v50 = vadd.f32 %v821_v48, %v1526_v11  ;;  %v823_v52 = vpop.f32.mrb[42].mxu1  ;;  %967 = vst [vmem:[#allocation8 + $0x100] sm:$0xff] %v913_v47  ;;  %v916_v55 = vadd.f32 %v1165_v53, %v1563_v59  ;;  %v907_v57 = vpop.f32.mrb[43].mxu0 }
 0x170   :  { %971 = vst [vmem:[#allocation8 + $0x120] sm:$0xff] %v820_v46  ;;  %v824_v54 = vadd.f32 %v823_v52, %v1521_v10  ;;  %v825_v56 = vpop.f32.mrb[43].mxu1  ;;  %961 = vst [vmem:[#allocation8 + $0xd0] sm:$0xff] %v905_v51  ;;  %v908_v2 = vadd.f32 %v907_v57, %v1563_v59 }
 0x171   :  { %972 = vst [vmem:[#allocation8 + $0x128] sm:$0xff] %v822_v50  ;;  %v826_v61 = vadd.f32 %v825_v56, %v1526_v11  ;;  %970 = vst [vmem:[#allocation8 + $0x118] sm:$0xff] %v916_v55 }
 0x172   :  { %974 = vst [vmem:[#allocation8 + $0x138] sm:$0xff] %v824_v54  ;;  %964 = vst [vmem:[#allocation8 + $0xe8] sm:$0xff] %v908_v2 }
 0x173   :  { %975 = vst [vmem:[#allocation8 + $0x140] sm:$0xff] %v826_v61 }
 0x174   :  { %v1168_v5 = vpop.f32.mrb[44].mxu0 }
 0x175   :  { %v829_v4 = vpop.f32.mrb[44].mxu1  ;;  %v929_v7 = vadd.f32 %v1168_v5, %v1563_v59  ;;  %v920_v9 = vpop.f32.mrb[45].mxu0 }
 0x176   :  { %v830_v6 = vadd.f32 %v829_v4, %v1521_v10  ;;  %v831_v8 = vpop.f32.mrb[45].mxu1  ;;  %v921_v13 = vadd.f32 %v920_v9, %v1563_v59  ;;  %v1169_v0 = vpop.f32.mrb[46].mxu0 }
 0x177   :  { %v832_v12 = vadd.f32 %v831_v8, %v1526_v11  ;;  %v833_v14 = vpop.f32.mrb[46].mxu1  ;;  %979 = vst [vmem:[#allocation8 + $0x160] sm:$0xff] %v929_v7  ;;  %v932_v16 = vadd.f32 %v1169_v0, %v1563_v59  ;;  %v923_v58 = vpop.f32.mrb[47].mxu0 }
 0x178   :  { %977 = vst [vmem:[#allocation8 + $0x150] sm:$0xff] %v830_v6  ;;  %v834_v15 = vadd.f32 %v833_v14, %v1521_v10  ;;  %v835_v17 = vpop.f32.mrb[47].mxu1  ;;  %973 = vst [vmem:[#allocation8 + $0x130] sm:$0xff] %v921_v13  ;;  %v924_v63 = vadd.f32 %v923_v58, %v1563_v59 }
 0x179   :  { %978 = vst [vmem:[#allocation8 + $0x158] sm:$0xff] %v832_v12  ;;  %v836_v60 = vadd.f32 %v835_v17, %v1526_v11  ;;  %982 = vst [vmem:[#allocation8 + $0x178] sm:$0xff] %v932_v16 }
 0x17a   :  { %980 = vst [vmem:[#allocation8 + $0x168] sm:$0xff] %v834_v15  ;;  %976 = vst [vmem:[#allocation8 + $0x148] sm:$0xff] %v924_v63 }
 0x17b   :  { %981 = vst [vmem:[#allocation8 + $0x170] sm:$0xff] %v836_v60 }
 0x17c   :  { %1330 = shalt.err (!%p1327_p0)
}
 0x17d   :  { %s1331_s10 = scalar_lea.hbm %s1631_s4, 6144 }
 0x17e   :  { %p1332_p1 = scmp.ne.s32.totalorder %s1631_s4, %s1331_s10  ;;  %p1335_p2 = scmp.lt.u32.totalorder %s1331_s10, %s1631_s4 }
 0x180   :  { %p1337_p3 = pnand %p1335_p2, %p1332_p1 }
 0x182   :  { %1340 = shalt.err (!%p1337_p3)
}
 0x183   :  { %1006 = dma.vmem_to_hbm [thread:$0]  %s1001_s6, 6144, %s1631_s4, [#allocation9], %s1357_s28, %s1357_s28, %s1358_s29  }
 0x184   :  { %1345 = dma.done.wait [#allocation4], 6144  }
 0x185   :  { %1346 = vsyncadd [#allocation4], 4294961152 }
 0x186   :  { %1347 = dma.done.wait [#allocation9], 6144  }
 0x187   :  { %1348 = vsyncadd [#allocation9], 4294961152 }
 0x188   :  { %1013 = vsyncpa [#allocation3], 1 }
 0x189   :  { %1014 = vsyncpa [#allocation6], 1 }
 0x18a   :  { %1015 = vsyncpa [#allocation4], 1 }
 0x18b   :  { %1016 = vsyncpa [#allocation9], 1 }

</bundles_post_ra>
